<compile_context>
chip_gen: v6e
topology: v6e:2x2x1
jax: 0.10.0
libtpu: 0.0.40
codegen_flags: <defaults>
</compile_context>

<pallas_src>
import math

import jax
import jax.numpy as jnp
from jax.experimental import pallas as pl
from jax.experimental.pallas import tpu as pltpu


def embed_gather_kernel(ids_ref, table_ref, out_ref, sem):
    """Gather one tile of token rows into the output block.

    ids_ref:   (padded_n,) int32 in SMEM (scalar-prefetched token ids)
    table_ref: (V, D) embedding table; an HBM ref (pl.ANY) for large tables or
               a resident VMEM block for small ones -- same code either way.
    out_ref:   (tile_n, D) output block in VMEM
    sem:       single DMA semaphore shared by all row copies of this tile
    """
    i = pl.program_id(0)
    tile_n = out_ref.shape[0]
    base = i * tile_n

    def start_row(r, carry):
        tok = ids_ref[base + r]
        pltpu.make_async_copy(table_ref.at[tok], out_ref.at[r], sem).start()
        return carry

    # Unrolled issue loop: descriptor pushes are the bottleneck for small rows.
    jax.lax.fori_loop(0, tile_n, start_row, 0, unroll=8)

    # One aggregate wait for the whole block: the DMA semaphore accumulates the
    # bytes of every row copy, and this descriptor waits for exactly
    # tile_n * D * itemsize bytes (replaces tile_n individual waits).
    pltpu.make_async_copy(out_ref, out_ref, sem).wait()


def _round_up(x, m):
    return (x + m - 1) // m * m


def embedding_forward(ids, table, *, max_tile_tokens=4096,
                      vmem_limit_bytes=32 * 1024 * 1024,
                      resident_table_bytes=12 * 1024 * 1024):
    """ids: int array of any shape; table: (V, D). Returns ids.shape + (D,)."""
    orig_shape = ids.shape
    v, d = table.shape
    n = math.prod(orig_shape) if orig_shape else 1
    row_bytes = d * table.dtype.itemsize
    table_bytes = v * row_bytes

    ids_flat = ids.reshape(-1).astype(jnp.int32)
    # TODO(synk): PyTorch nn.Embedding raises on out-of-range indices; a DMA
    # gather cannot raise, so clamp into range instead of reading OOB.
    ids_flat = jnp.clip(ids_flat, 0, v - 1)

    # --- tile size -----------------------------------------------------------
    # Multiple of 8 sublanes; cap so the double-buffered output block uses at
    # most ~half the scoped VMEM budget (budget itself <= v7x's 64 MiB / TC).
    tn = max(8, min(max_tile_tokens,
                    (vmem_limit_bytes // 2) // (2 * row_bytes)) // 8 * 8)
    # Keep >= 2 grid steps when there is enough work: the "parallel" grid axis
    # is what shards across v7x's two TensorCores.
    tn = min(tn, max(8, _round_up(-(-n // 2), 8)))
    padded_n = _round_up(n, tn)
    if padded_n != n:
        # Pad rows gather (clamped) row 0; results are sliced off below.
        ids_flat = jnp.pad(ids_flat, (0, padded_n - n))
    grid = (padded_n // tn,)

    # --- table placement -----------------------------------------------------
    # Small tables: keep the table resident in VMEM (constant index_map), read
    # from HBM once, row gathers become local VMEM->VMEM copies.
    # Large tables: leave in HBM (pl.ANY) and gather rows straight from HBM.
    table_resident = (
        table_bytes <= resident_table_bytes
        and 2 * table_bytes + 4 * tn * row_bytes + (2 << 20) <= vmem_limit_bytes
    )
    if table_resident:
        table_spec = pl.BlockSpec((v, d), lambda i, ids: (0, 0))
    else:
        table_spec = pl.BlockSpec(memory_space=pl.ANY)

    table_hbm_read = table_bytes if table_resident else padded_n * row_bytes
    cost = pl.CostEstimate(
        flops=0,
        transcendentals=0,
        bytes_accessed=int(table_hbm_read + padded_n * row_bytes + padded_n * 4),
    )

    out = pl.pallas_call(
        embed_gather_kernel,
        out_shape=jax.ShapeDtypeStruct((padded_n, d), table.dtype),
        grid_spec=pltpu.PrefetchScalarGridSpec(
            num_scalar_prefetch=1,                        # ids -> SMEM
            grid=grid,
            in_specs=[table_spec],
            out_specs=pl.BlockSpec((tn, d), lambda i, ids: (i, 0)),
            scratch_shapes=[pltpu.SemaphoreType.DMA(())],
        ),
        compiler_params=pltpu.CompilerParams(
            dimension_semantics=("parallel",),
            vmem_limit_bytes=vmem_limit_bytes,
        ),
        cost_estimate=cost,
    )(ids_flat, table)

    return out[:n].reshape(*orig_shape, d)


if __name__ == "__main__":
    vocab_size = 1000
    embedding_dim = 128   # multiple of 128 -> lane-dense output stores
    batch, seq = 2, 8

    key = jax.random.PRNGKey(0)
    k_table, k_ids = jax.random.split(key)

    # nn.Embedding default init: weight ~ N(0, 1)
    table = jax.random.normal(
        k_table, (vocab_size, embedding_dim), dtype=jnp.float32
    )
    ids = jax.random.randint(k_ids, (batch, seq), 0, vocab_size, dtype=jnp.int32)

    ref = table[ids]   # same semantics as nn.Embedding forward

    # 1) VMEM-resident fast path (demo table = 512 KB, fits on-chip).
    out = jax.block_until_ready(embedding_forward(ids, table))
    assert out.shape == (batch, seq, embedding_dim)
    assert jnp.allclose(out, ref), "resident-path mismatch vs reference gather"

    # 2) HBM row-gather path (what VMEM-exceeding tables use); force it by
    #    zeroing the resident-table budget.
    out_hbm = jax.block_until_ready(
        embedding_forward(ids, table, resident_table_bytes=0)
    )
    assert jnp.allclose(out_hbm, ref), "HBM-path mismatch vs reference gather"

    print("KERNEL_OK")
</pallas_src>

<mosaic_0001>
module attributes {stable_mosaic.version = 11 : i64} {
  func.func @embed_gather_kernel(%arg0: i32, %arg1: memref<16xi32, #tpu.memory_space<smem>>, %arg2: memref<1000x128xf32, #tpu.memory_space<vmem>>, %arg3: memref<8x128xf32, #tpu.memory_space<vmem>>, %arg4: memref<!tpu.dma_semaphore, #tpu.memory_space<semaphore_mem>>) attributes {dimension_semantics = [#tpu.dimension_semantics<parallel>], iteration_bounds = array<i64: 2>, scalar_prefetch = 1 : i64, scratch_operands = 1 : i64, tpu.core_type = #tpu.core_type<tc>, window_params = [{pipeline_mode = #tpu.pipeline_mode<synchronous>, transform_indices = @transform_0, window_bounds = array<i64: 1000, 128>}, {transform_indices = @transform_1, window_bounds = array<i64: 8, 128>}]} {
    %c8_i32 = arith.constant 8 : i32
    %0 = arith.muli %arg0, %c8_i32 : i32
    %c0_i32 = arith.constant 0 : i32
    %1 = arith.addi %0, %c0_i32 : i32
    %2 = arith.index_cast %1 : i32 to index
    %3 = memref.load %arg1[%2] : memref<16xi32, #tpu.memory_space<smem>>
    %c0_i32_0 = arith.constant 0 : i32
    %4 = tpu.memref_slice %arg2[%3, %c0_i32_0] : memref<1000x128xf32, #tpu.memory_space<vmem>> -> memref<1x128xf32, #tpu.memory_space<vmem>>
    %5 = tpu.memref_squeeze %4 : memref<1x128xf32, #tpu.memory_space<vmem>> -> memref<128xf32, #tpu.memory_space<vmem>>
    %c0_i32_1 = arith.constant 0 : i32
    %6 = tpu.memref_slice %arg3[%c0_i32, %c0_i32_1] : memref<8x128xf32, #tpu.memory_space<vmem>> -> memref<1x128xf32, #tpu.memory_space<vmem>>
    %7 = tpu.memref_squeeze %6 : memref<1x128xf32, #tpu.memory_space<vmem>> -> memref<128xf32, #tpu.memory_space<vmem>>
    tpu.enqueue_dma source(%5 : memref<128xf32, #tpu.memory_space<vmem>>) target(%7 : memref<128xf32, #tpu.memory_space<vmem>>) target_semaphore(%arg4 : memref<!tpu.dma_semaphore, #tpu.memory_space<semaphore_mem>>)
    %c1_i32 = arith.constant 1 : i32
    %8 = arith.addi %0, %c1_i32 : i32
    %9 = arith.index_cast %8 : i32 to index
    %10 = memref.load %arg1[%9] : memref<16xi32, #tpu.memory_space<smem>>
    %c0_i32_2 = arith.constant 0 : i32
    %11 = tpu.memref_slice %arg2[%10, %c0_i32_2] : memref<1000x128xf32, #tpu.memory_space<vmem>> -> memref<1x128xf32, #tpu.memory_space<vmem>>
    %12 = tpu.memref_squeeze %11 : memref<1x128xf32, #tpu.memory_space<vmem>> -> memref<128xf32, #tpu.memory_space<vmem>>
    %c0_i32_3 = arith.constant 0 : i32
    %13 = tpu.memref_slice %arg3[%c1_i32, %c0_i32_3] : memref<8x128xf32, #tpu.memory_space<vmem>> -> memref<1x128xf32, #tpu.memory_space<vmem>>
    %14 = tpu.memref_squeeze %13 : memref<1x128xf32, #tpu.memory_space<vmem>> -> memref<128xf32, #tpu.memory_space<vmem>>
    tpu.enqueue_dma source(%12 : memref<128xf32, #tpu.memory_space<vmem>>) target(%14 : memref<128xf32, #tpu.memory_space<vmem>>) target_semaphore(%arg4 : memref<!tpu.dma_semaphore, #tpu.memory_space<semaphore_mem>>)
    %c2_i32 = arith.constant 2 : i32
    %15 = arith.addi %0, %c2_i32 : i32
    %16 = arith.index_cast %15 : i32 to index
    %17 = memref.load %arg1[%16] : memref<16xi32, #tpu.memory_space<smem>>
    %c0_i32_4 = arith.constant 0 : i32
    %18 = tpu.memref_slice %arg2[%17, %c0_i32_4] : memref<1000x128xf32, #tpu.memory_space<vmem>> -> memref<1x128xf32, #tpu.memory_space<vmem>>
    %19 = tpu.memref_squeeze %18 : memref<1x128xf32, #tpu.memory_space<vmem>> -> memref<128xf32, #tpu.memory_space<vmem>>
    %c0_i32_5 = arith.constant 0 : i32
    %20 = tpu.memref_slice %arg3[%c2_i32, %c0_i32_5] : memref<8x128xf32, #tpu.memory_space<vmem>> -> memref<1x128xf32, #tpu.memory_space<vmem>>
    %21 = tpu.memref_squeeze %20 : memref<1x128xf32, #tpu.memory_space<vmem>> -> memref<128xf32, #tpu.memory_space<vmem>>
    tpu.enqueue_dma source(%19 : memref<128xf32, #tpu.memory_space<vmem>>) target(%21 : memref<128xf32, #tpu.memory_space<vmem>>) target_semaphore(%arg4 : memref<!tpu.dma_semaphore, #tpu.memory_space<semaphore_mem>>)
    %c3_i32 = arith.constant 3 : i32
    %22 = arith.addi %0, %c3_i32 : i32
    %23 = arith.index_cast %22 : i32 to index
    %24 = memref.load %arg1[%23] : memref<16xi32, #tpu.memory_space<smem>>
    %c0_i32_6 = arith.constant 0 : i32
    %25 = tpu.memref_slice %arg2[%24, %c0_i32_6] : memref<1000x128xf32, #tpu.memory_space<vmem>> -> memref<1x128xf32, #tpu.memory_space<vmem>>
    %26 = tpu.memref_squeeze %25 : memref<1x128xf32, #tpu.memory_space<vmem>> -> memref<128xf32, #tpu.memory_space<vmem>>
    %c0_i32_7 = arith.constant 0 : i32
    %27 = tpu.memref_slice %arg3[%c3_i32, %c0_i32_7] : memref<8x128xf32, #tpu.memory_space<vmem>> -> memref<1x128xf32, #tpu.memory_space<vmem>>
    %28 = tpu.memref_squeeze %27 : memref<1x128xf32, #tpu.memory_space<vmem>> -> memref<128xf32, #tpu.memory_space<vmem>>
    tpu.enqueue_dma source(%26 : memref<128xf32, #tpu.memory_space<vmem>>) target(%28 : memref<128xf32, #tpu.memory_space<vmem>>) target_semaphore(%arg4 : memref<!tpu.dma_semaphore, #tpu.memory_space<semaphore_mem>>)
    %c4_i32 = arith.constant 4 : i32
    %29 = arith.addi %0, %c4_i32 : i32
    %30 = arith.index_cast %29 : i32 to index
    %31 = memref.load %arg1[%30] : memref<16xi32, #tpu.memory_space<smem>>
    %c0_i32_8 = arith.constant 0 : i32
    %32 = tpu.memref_slice %arg2[%31, %c0_i32_8] : memref<1000x128xf32, #tpu.memory_space<vmem>> -> memref<1x128xf32, #tpu.memory_space<vmem>>
    %33 = tpu.memref_squeeze %32 : memref<1x128xf32, #tpu.memory_space<vmem>> -> memref<128xf32, #tpu.memory_space<vmem>>
    %c0_i32_9 = arith.constant 0 : i32
    %34 = tpu.memref_slice %arg3[%c4_i32, %c0_i32_9] : memref<8x128xf32, #tpu.memory_space<vmem>> -> memref<1x128xf32, #tpu.memory_space<vmem>>
    %35 = tpu.memref_squeeze %34 : memref<1x128xf32, #tpu.memory_space<vmem>> -> memref<128xf32, #tpu.memory_space<vmem>>
    tpu.enqueue_dma source(%33 : memref<128xf32, #tpu.memory_space<vmem>>) target(%35 : memref<128xf32, #tpu.memory_space<vmem>>) target_semaphore(%arg4 : memref<!tpu.dma_semaphore, #tpu.memory_space<semaphore_mem>>)
    %c5_i32 = arith.constant 5 : i32
    %36 = arith.addi %0, %c5_i32 : i32
    %37 = arith.index_cast %36 : i32 to index
    %38 = memref.load %arg1[%37] : memref<16xi32, #tpu.memory_space<smem>>
    %c0_i32_10 = arith.constant 0 : i32
    %39 = tpu.memref_slice %arg2[%38, %c0_i32_10] : memref<1000x128xf32, #tpu.memory_space<vmem>> -> memref<1x128xf32, #tpu.memory_space<vmem>>
    %40 = tpu.memref_squeeze %39 : memref<1x128xf32, #tpu.memory_space<vmem>> -> memref<128xf32, #tpu.memory_space<vmem>>
    %c0_i32_11 = arith.constant 0 : i32
    %41 = tpu.memref_slice %arg3[%c5_i32, %c0_i32_11] : memref<8x128xf32, #tpu.memory_space<vmem>> -> memref<1x128xf32, #tpu.memory_space<vmem>>
    %42 = tpu.memref_squeeze %41 : memref<1x128xf32, #tpu.memory_space<vmem>> -> memref<128xf32, #tpu.memory_space<vmem>>
    tpu.enqueue_dma source(%40 : memref<128xf32, #tpu.memory_space<vmem>>) target(%42 : memref<128xf32, #tpu.memory_space<vmem>>) target_semaphore(%arg4 : memref<!tpu.dma_semaphore, #tpu.memory_space<semaphore_mem>>)
    %c6_i32 = arith.constant 6 : i32
    %43 = arith.addi %0, %c6_i32 : i32
    %44 = arith.index_cast %43 : i32 to index
    %45 = memref.load %arg1[%44] : memref<16xi32, #tpu.memory_space<smem>>
    %c0_i32_12 = arith.constant 0 : i32
    %46 = tpu.memref_slice %arg2[%45, %c0_i32_12] : memref<1000x128xf32, #tpu.memory_space<vmem>> -> memref<1x128xf32, #tpu.memory_space<vmem>>
    %47 = tpu.memref_squeeze %46 : memref<1x128xf32, #tpu.memory_space<vmem>> -> memref<128xf32, #tpu.memory_space<vmem>>
    %c0_i32_13 = arith.constant 0 : i32
    %48 = tpu.memref_slice %arg3[%c6_i32, %c0_i32_13] : memref<8x128xf32, #tpu.memory_space<vmem>> -> memref<1x128xf32, #tpu.memory_space<vmem>>
    %49 = tpu.memref_squeeze %48 : memref<1x128xf32, #tpu.memory_space<vmem>> -> memref<128xf32, #tpu.memory_space<vmem>>
    tpu.enqueue_dma source(%47 : memref<128xf32, #tpu.memory_space<vmem>>) target(%49 : memref<128xf32, #tpu.memory_space<vmem>>) target_semaphore(%arg4 : memref<!tpu.dma_semaphore, #tpu.memory_space<semaphore_mem>>)
    %c7_i32 = arith.constant 7 : i32
    %50 = arith.addi %0, %c7_i32 : i32
    %51 = arith.index_cast %50 : i32 to index
    %52 = memref.load %arg1[%51] : memref<16xi32, #tpu.memory_space<smem>>
    %c0_i32_14 = arith.constant 0 : i32
    %53 = tpu.memref_slice %arg2[%52, %c0_i32_14] : memref<1000x128xf32, #tpu.memory_space<vmem>> -> memref<1x128xf32, #tpu.memory_space<vmem>>
    %54 = tpu.memref_squeeze %53 : memref<1x128xf32, #tpu.memory_space<vmem>> -> memref<128xf32, #tpu.memory_space<vmem>>
    %c0_i32_15 = arith.constant 0 : i32
    %55 = tpu.memref_slice %arg3[%c7_i32, %c0_i32_15] : memref<8x128xf32, #tpu.memory_space<vmem>> -> memref<1x128xf32, #tpu.memory_space<vmem>>
    %56 = tpu.memref_squeeze %55 : memref<1x128xf32, #tpu.memory_space<vmem>> -> memref<128xf32, #tpu.memory_space<vmem>>
    tpu.enqueue_dma source(%54 : memref<128xf32, #tpu.memory_space<vmem>>) target(%56 : memref<128xf32, #tpu.memory_space<vmem>>) target_semaphore(%arg4 : memref<!tpu.dma_semaphore, #tpu.memory_space<semaphore_mem>>)
    %c8_i32_16 = arith.constant 8 : i32
    tpu.wait_dma2 semaphore(%arg4 : memref<!tpu.dma_semaphore, #tpu.memory_space<semaphore_mem>>) src(%arg3 : memref<8x128xf32, #tpu.memory_space<vmem>>) dst(%arg3 : memref<8x128xf32, #tpu.memory_space<vmem>>)
    return
  }
  func.func @transform_0(%arg0: i32, %arg1: memref<16xi32, #tpu.memory_space<smem>>) -> (i32, i32) {
    %c0_i32 = arith.constant 0 : i32
    %c0_i32_0 = arith.constant 0 : i32
    %c0_i32_1 = arith.constant 0 : i32
    return %c0_i32, %c0_i32_0 : i32, i32
  }
  func.func @transform_1(%arg0: i32, %arg1: memref<16xi32, #tpu.memory_space<smem>>) -> (i32, i32) {
    %c0_i32 = arith.constant 0 : i32
    %c0_i32_0 = arith.constant 0 : i32
    return %arg0, %c0_i32 : i32, i32
  }
}

</mosaic_0001>

<bundles_post_ra>
// kernel: tpu_custom_call.1
= control target key start
LH: loop header
LB: loop body
LE: loop exit
PB: predicated region body
PF: predicated region fallthrough
CT: control target
= control target key end

     0   :  { %s874_s9 = smov [#allocation4]   ;;  %s1023_s0 = inlined_call_operand.hbm [shape: s32[16], index: 0, kind: input, shape index: {}]   ;;  %s1024_s1 = inlined_call_operand.hbm [shape: f32[1000,128], index: 1, kind: input, shape index: {}]   ;;  %s1025_s2 = inlined_call_operand.hbm [shape: f32[16,128], index: 2, kind: output, shape index: {}]  }
   0x1   :  { %8 = dma.hbm_to_smem %s1023_s0, 16, %s874_s9, [#allocation3] }
   0x2   :  { %846 = dma.done.wait [#allocation3], 16 }
   0x3   :  { %847 = vsyncadd [#allocation3], 4294967280 }
   0x4   :  { %10 = sfence }
   0x5   :  { %11 = vsyncpa [#allocation6], 0 }
   0x6   :  { %12 = vsyncpa [#allocation7], 0 }
   0x7   :  { %14 = vsyncpa [#allocation7 + $0x1], 0  ;;  %s897_s12 = smov 0   ;;  %s899_s13 = smov 0  }
   0x8   :  { %s901_s14 = smov 0   ;;  %s903_s15 = smov 0  }
   0x9 LB: > { %s918_s0 = sadd.s32 4294967295, %s872_s15   ;;  %s691_s16 = sadd.s32 4294967294, %s872_s15   ;;  %s872_s15 = sphi %s903_s15, %s1033_s15   ;;  %s868_s14 = sphi %s901_s14, %s1032_s14   ;;  %s864_s13 = sphi %s899_s13, %s1031_s13   ;;  %s860_s12 = sphi %s897_s12, %s1030_s12  }
   0xa   : > { %s922_s17 = sadd.s32 1, %s872_s15   ;;  %s48_s18 = sadd.s32 1, %s868_s14 }
   0xb   : > { %s45_s19 = ssub.s32 %s872_s15, %s922_s17  ;;  %p58_p0 = scmp.ne.s32.totalorder %s868_s14, %s864_s13 }
   0xc   : > { %p46_p1 = scmp.eq.s32.totalorder %s45_s19, 0  ;;  %p59_p2 = scmp.eq.s32.totalorder %s918_s0, 1 }
   0xd   : > { %p64_p3 = scmp.ne.s32.totalorder %s864_s13, %s860_s12  ;;  %p65_p4 = scmp.eq.s32.totalorder %s691_s16, 1 }
   0xe   : > { %s933_s20 = scalar_select %p46_p1, %s868_s14, %s48_s18  }
   0xf   : > { %p935_p5 = por %p59_p2, %p58_p0  ;;  %p939_p6 = por %p65_p4, %p64_p3 }
  0x10   : > { %p692_p7 = scmp.ge.s32.totalorder %s872_s15, 1  ;;  %p72_p8 = scmp.lt.s32.totalorder %s872_s15, 3 }
  0x11   : > { %s1027_s22 = scalar_select %p939_p6, 1, 0 }
  0x12   : > { %p731_p9 = scmp.eq.s32.totalorder %s918_s0, 0  ;;  %p946_p10 = pnand %p692_p7, %p72_p8 }
  0x13   : > { %s875_s24 = smov [#allocation5]  }
  0x14   : > { %s84_s25 = sshll.u32 %s875_s24, 4  ;;  %p723_p11 = pneg %p946_p10  ;;  %s85_s25 = int_to_ptr.vmem [resolvable:$true] %s84_s25 }
  0x15   : > { %s789_s26 = scalar_lea.vmem %s85_s25, 16000  ;;  %p797_p3 = scmp.lt.s32.totalorder %s85_s25, %s85_s25 }
  0x16   : > { %p724_p12 = pnand %p731_p9, %p723_p11  ;;  %p790_p0 = scmp.ne.s32.totalorder %s85_s25, %s789_s26 }
  0x17   : > { %p798_p4 = scmp.lt.s32.totalorder %s789_s26, %s789_s26 }
  0x18   : > { %p780_p13 = pneg %p724_p12 }
  0x19   : > { %p799_p6 = por %p798_p4, %p797_p3 }
  0x1a   : > { %p792_p1 = pnand %p790_p0, %p780_p13 }
  0x1c   : > { %p793_p2 = pneg %p792_p1 }
  0x1e   : > { %p800_p7 = pnand %p799_p6, %p793_p2 }
  0x20   : > { %803 = shalt.err (!%p800_p7)
}
  0x21   : > { %s876_s27 = smov 128   ;;  %s877_s28 = smov 8  }
  0x22   : > { %726 = dma.hbm_to_vmem [thread:$0]  (!%p724_p12), %s1024_s1, 16000, %s85_s25, [#allocation6], %s876_s27, %s876_s27, %s877_s28  }
  0x23   : > { %100 = sbr.rel (%p946_p10) target bundleno = 146 (0x92), region = 24 }
  0x28   : > { %849 = dma.done.wait (%p731_p9), [#allocation6], 16000  }
  0x29   : > { %851 = vsyncadd (%p731_p9), [#allocation6], 4294951296  ;;  %s964_s3 = sshll.u32 %s918_s0, 3  ;;  %s112_s4 = sand.u32 1, %s864_s13  }
  0x2a   : > { %s116_s5 = sld [smem:[#allocation4 + %s964_s3]]  ;;  %s696_s6 = sshll.u32 %s112_s4, 3 }
  0x2b   : > { %s970_s8 = scalar_lea.vmem [#allocation8], %s696_s6 }
  0x30   : > { %s117_s7 = scalar_lea.vmem [#allocation5], %s116_s5 }
  0x31   : > { %v136_v0 = vld [vmem:[%s117_s7] sm:$0x1] }
  0x32   : > { %137 = vst [vmem:[%s970_s8] sm:$0x1] %v136_v0 }
  0x33   : > { %163 = vsyncadd [#allocation2], 16  ;;  %s164_s9 = sadd.s32 1, %s964_s3 }
  0x34   : > { %s165_s10 = sld [smem:[#allocation4 + %s164_s9]] }
  0x3a   : > { %s166_s11 = scalar_lea.vmem [#allocation5], %s165_s10 }
  0x3b   : > { %v186_v1 = vld [vmem:[%s166_s11] sm:$0x1] }
  0x3c   : > { %699 = vst [vmem:[%s970_s8 + $0x1] sm:$0x1] %v186_v1 }
  0x3d   : > { %213 = vsyncadd [#allocation2], 16  ;;  %s214_s16 = sadd.s32 2, %s964_s3 }
  0x3e   : > { %s215_s18 = sld [smem:[#allocation4 + %s214_s16]] }
  0x44   : > { %s216_s19 = scalar_lea.vmem [#allocation5], %s215_s18 }
  0x45   : > { %v236_v2 = vld [vmem:[%s216_s19] sm:$0x1] }
  0x46   : > { %701 = vst [vmem:[%s970_s8 + $0x2] sm:$0x1] %v236_v2 }
  0x47   : > { %263 = vsyncadd [#allocation2], 16  ;;  %s264_s23 = sadd.s32 3, %s964_s3 }
  0x48   : > { %s265_s24 = sld [smem:[#allocation4 + %s264_s23]] }
  0x4e   : > { %s266_s25 = scalar_lea.vmem [#allocation5], %s265_s24 }
  0x4f   : > { %v286_v3 = vld [vmem:[%s266_s25] sm:$0x1] }
  0x50   : > { %703 = vst [vmem:[%s970_s8 + $0x3] sm:$0x1] %v286_v3 }
  0x51   : > { %313 = vsyncadd [#allocation2], 16  ;;  %s314_s26 = sadd.s32 4, %s964_s3 }
  0x52   : > { %s315_s27 = sld [smem:[#allocation4 + %s314_s26]] }
  0x58   : > { %s316_s28 = scalar_lea.vmem [#allocation5], %s315_s27 }
  0x59   : > { %v336_v4 = vld [vmem:[%s316_s28] sm:$0x1] }
  0x5a   : > { %705 = vst [vmem:[%s970_s8 + $0x4] sm:$0x1] %v336_v4 }
  0x5b   : > { %363 = vsyncadd [#allocation2], 16  ;;  %s364_s29 = sadd.s32 5, %s964_s3 }
  0x5c   : > { %s365_s30 = sld [smem:[#allocation4 + %s364_s29]] }
  0x62   : > { %s366_s5 = scalar_lea.vmem [#allocation5], %s365_s30 }
  0x63   : > { %v386_v5 = vld [vmem:[%s366_s5] sm:$0x1] }
  0x64   : > { %707 = vst [vmem:[%s970_s8 + $0x5] sm:$0x1] %v386_v5 }
  0x65   : > { %413 = vsyncadd [#allocation2], 16  ;;  %s414_s6 = sadd.s32 6, %s964_s3 }
  0x66   : > { %s415_s7 = sld [smem:[#allocation4 + %s414_s6]] }
  0x6c   : > { %s416_s9 = scalar_lea.vmem [#allocation5], %s415_s7 }
  0x6d   : > { %v436_v6 = vld [vmem:[%s416_s9] sm:$0x1] }
  0x6e   : > { %709 = vst [vmem:[%s970_s8 + $0x6] sm:$0x1] %v436_v6 }
  0x6f   : > { %463 = vsyncadd [#allocation2], 16  ;;  %s464_s10 = sadd.s32 7, %s964_s3 }
  0x70   : > { %s465_s11 = sld [smem:[#allocation4 + %s464_s10]] }
  0x76   : > { %s466_s16 = scalar_lea.vmem [#allocation5], %s465_s11 }
  0x77   : > { %v486_v7 = vld [vmem:[%s466_s16] sm:$0x1] }
  0x78   : > { %711 = vst [vmem:[%s970_s8 + $0x7] sm:$0x1] %v486_v7 }
  0x79   : > { %513 = vsyncadd [#allocation2], 16 }
  0x7a   : > { %852 = dma.done.wait [#allocation2], 128 }
  0x7b   : > { %853 = vsyncadd [#allocation2], 4294967168  ;;  %s713_s18 = sshll.u32 %s918_s0, 7  ;;  %s531_s25 = sshll.u32 %s970_s8, 4  ;;  %s532_s25 = int_to_ptr.vmem [resolvable:$true] %s531_s25 }
  0x7c   : > { %s529_s24 = scalar_lea.hbm %s1025_s2, %s713_s18  ;;  %s518_s3 = scalar_lea.sflag [#allocation7], %s112_s4 }
  0x7d   : > { %s804_s26 = scalar_lea.vmem %s532_s25, 128  ;;  %s878_s27 = smov [#allocation8]  }
  0x7e   : > { %p805_p6 = scmp.ne.s32.totalorder %s532_s25, %s804_s26  ;;  %s808_s28 = sshll.u32 %s878_s27, 4  ;;  %s809_s28 = int_to_ptr.vmem [resolvable:$false] %s808_s28 }
  0x7f   : > { %s810_s29 = scalar_lea.vmem %s809_s28, 256  ;;  %p811_p10 = scmp.lt.s32.totalorder %s532_s25, %s809_s28 }
  0x80   : > { %p806_p8 = pnand %p805_p6, %p935_p5  ;;  %p812_p11 = scmp.lt.s32.totalorder %s810_s29, %s804_s26 }
  0x82   : > { %p807_p9 = pneg %p806_p8  ;;  %p813_p12 = por %p812_p11, %p811_p10 }
  0x84   : > { %p814_p13 = pnand %p813_p12, %p807_p9 }
  0x86   : > { %817 = shalt.err (!%p814_p13)
}
  0x87   : > { %s818_s0 = scalar_lea.hbm %s529_s24, 128  ;;  %s822_s30 = scalar_lea.hbm %s1025_s2, 256 }
  0x88   : > { %p819_p0 = scmp.ne.s32.totalorder %s529_s24, %s818_s0  ;;  %p823_p3 = scmp.lt.s32.totalorder %s529_s24, %s1025_s2 }
  0x89   : > { %p824_p4 = scmp.lt.s32.totalorder %s822_s30, %s818_s0 }
  0x8a   : > { %p820_p1 = pnand %p819_p0, %p935_p5 }
  0x8b   : > { %p825_p7 = por %p824_p4, %p823_p3 }
  0x8c   : > { %p821_p2 = pneg %p820_p1 }
  0x8e   : > { %p826_p6 = pnand %p825_p7, %p821_p2 }
  0x90   : > { %829 = shalt.err (!%p826_p6)
}
  0x91   : > { %721 = dma.vmem_to_hbm [thread:$0]  (%p935_p5), %s532_s25, 128, %s529_s24, %s518_s3  }
  0x92 PF: > { %p733_p8 = scmp.ge.s32.totalorder %s872_s15, 2  ;;  %s543_s7 = sand.u32 1, %s860_s12  }
  0x93   : > { %p1029_p9 = scmp.ne.s32.totalorder %s1027_s22, 0  ;;  %s544_s9 = scalar_lea.sflag [#allocation7], %s543_s7 }
  0x95   : > { %p728_p10 = pnand %p733_p8, %p1029_p9 }
  0x97   : > { %p729_p11 = pneg %p728_p10 }
  0x99   : > { %855 = dma.done.wait (%p729_p11), %s544_s9, 128  }
  0x9a   : > { %857 = vsyncadd (%p729_p11), %s544_s9, 4294967168  ;;  %p17_p12 = scmp.ge.s32.totalorder %s922_s17, 4   ;;  %s1030_s12 = smov %s864_s13 }
  0x9b   : > { %s1031_s13 = smov %s868_s14  ;;  %s1032_s14 = smov %s933_s20 }
  0x9c   : > { %s1033_s15 = smov %s922_s17  ;;  %19 = sbr.rel (!%p17_p12) target bundleno = 9 (0x9), region = 396 }
  0xa1   :  { %549 = vsyncpa [#allocation6], 1 }
  0xa2   :  { %551 = vsyncpa [#allocation6 + $0x1], 1 }
  0xa3   :  { %552 = vsyncpa [#allocation7], 1 }
  0xa4   :  { %554 = vsyncpa [#allocation7 + $0x1], 1 }
  0xa5   :  { %555 = vsyncmov [#allocation2] }
  0xa8   :  { %s556_s15 = vpop.sfrf %555 }
  0xa9   :  { %p716_p5 = scmp.ne.s32.totalorder %s556_s15, 0 }
  0xab   :  { %560 = shalt.err (%p716_p5)  }

</bundles_post_ra>
